<compile_context>
chip_gen: v7x
topology: tpu7x:2x2x1
jax: 0.10.0
libtpu: 0.0.40
codegen_flags: <defaults>
</compile_context>

<pallas_src>
import functools

import jax
import jax.numpy as jnp
from jax.experimental import pallas as pl
from jax.experimental.pallas import tpu as pltpu


# --------------------------------------------------------------------------------------
# Kernel
# --------------------------------------------------------------------------------------
def _double_conv_bn_relu_kernel(x_ref, wt1_ref, g1_ref, b1_ref, a1_ref,
                                wt2_ref, g2_ref, b2_ref, a2_ref, out_ref,
                                xpad1_ref, xpad2_ref, *,
                                K, pad, H, H1, W1, C1, H2, W2, C2, eps):
    """Fused [conv -> BN(train) -> ReLU] x 2, stride 1.

    x_ref    : (N, H,  W*Cin)           bf16 lane-dense input slab
    wt*_ref  : (K, Win*Cin, Wo*Cout)    bf16 per-kh width-Toeplitz conv weights
                                        (width zero-padding folded into the Toeplitz matrix)
    g*/b*    : (1, Wo*Cout)             f32 BN gamma/beta, lane-tiled (period Cout)
    a*_ref   : (Wo*Cout, Wo*Cout)       f32 0/1 per-channel fold matrix (a[i,j]=1 iff i%C==j%C)
    out_ref  : (N*H2, W2*C2)            f32 lane-dense output slab
    xpad*_ref: (N, Ho+2p, Wo*C)         f32 VMEM scratch, height-halo padded slabs
    """
    N = x_ref.shape[0]

    # ---- conv1 input: physical padding only along height; zero only the halo rows ----
    if pad > 0:
        zrow1 = jnp.zeros((N, pad, xpad1_ref.shape[2]), xpad1_ref.dtype)
        xpad1_ref[:, :pad, :] = zrow1
        xpad1_ref[:, pad + H:, :] = zrow1
    xpad1_ref[:, pad:pad + H, :] = x_ref[...].astype(xpad1_ref.dtype)

    def conv_bn_relu(xpad_ref, wt_ref, g_ref, b_ref, a_ref, Ho, Wo, Co):
        """One ConvBlock: per-kh Toeplitz matmuls (bf16 MXU, f32 acc) + BN(train) + ReLU."""
        L = xpad_ref.shape[2]          # contraction width = Win * Cin
        M_rows = N * Ho                # matmul row count (output lanes hold Wo*Co)
        acc = jnp.zeros((M_rows, Wo * Co), jnp.float32)
        for kh in range(K):            # static unroll, K is tiny
            lhs = xpad_ref[:, kh:kh + Ho, :].reshape(M_rows, L).astype(jnp.bfloat16)
            acc = acc + jnp.dot(lhs, wt_ref[kh], preferred_element_type=jnp.float32)

        # BatchNorm2d (training-mode batch stats, biased variance), reductions on the MXU:
        # a ones row folds the (n, oh) rows, the a_ref matmul folds the Wo lane-groups / channel.
        inv_m = 1.0 / float(N * Ho * Wo)
        ones_row = jnp.full((1, M_rows), inv_m, jnp.float32)
        stat = jnp.dot(ones_row, jnp.concatenate([acc, acc * acc], axis=1),
                       preferred_element_type=jnp.float32)                     # (1, 2*Wo*Co)
        mean_l = jnp.dot(stat[:, :Wo * Co], a_ref[...],
                         preferred_element_type=jnp.float32)                   # (1, Wo*Co)
        ex2_l = jnp.dot(stat[:, Wo * Co:], a_ref[...],
                        preferred_element_type=jnp.float32)                    # (1, Wo*Co)
        # TODO(synk): E[x^2]-mean^2 can cancel badly if |mean| >> std; fine at these scales.
        var_l = ex2_l - mean_l * mean_l
        scale_l = g_ref[...] * jax.lax.rsqrt(var_l + eps)                      # (1, Wo*Co)
        shift_l = b_ref[...] - mean_l * scale_l
        return jnp.maximum(acc * scale_l + shift_l, 0.0)                       # (N*Ho, Wo*Co) f32

    y1 = conv_bn_relu(xpad1_ref, wt1_ref, g1_ref, b1_ref, a1_ref, H1, W1, C1)

    # ---- intermediate never leaves VMEM: height-halo pad it for conv2 ----
    if pad > 0:
        zrow2 = jnp.zeros((N, pad, xpad2_ref.shape[2]), xpad2_ref.dtype)
        xpad2_ref[:, :pad, :] = zrow2
        xpad2_ref[:, pad + H1:, :] = zrow2
    xpad2_ref[:, pad:pad + H1, :] = y1.reshape(N, H1, W1 * C1)

    y2 = conv_bn_relu(xpad2_ref, wt2_ref, g2_ref, b2_ref, a2_ref, H2, W2, C2)

    out_ref[...] = y2.astype(out_ref.dtype)


# --------------------------------------------------------------------------------------
# Wrapper (layout plumbing only; all compute happens in the kernel)
# --------------------------------------------------------------------------------------
def _toeplitz_weight(w_oihw, w_in, w_out, pad):
    """OIHW conv weight -> (K, w_in*Cin, w_out*Cout) per-kh width-Toeplitz matmul operand.

    wt[kh, iw*Cin + c, ow*Cout + co] = w[co, c, kh, iw - ow + pad] if 0 <= iw-ow+pad < K else 0,
    i.e. width zero-padding is folded into the weight (no physical width halo needed).
    """
    Cout, Cin, K, _ = w_oihw.shape
    w_hwio = jnp.transpose(w_oihw, (2, 3, 1, 0))                        # (Kh, Kw, Cin, Cout)
    iw = jnp.arange(w_in)[:, None, None]
    ow = jnp.arange(w_out)[None, :, None]
    kw = jnp.arange(K)[None, None, :]
    sel = (iw == ow + kw - pad).astype(w_hwio.dtype)                    # (w_in, w_out, Kw)
    wt = jnp.einsum("xok,hkcd->hxcod", sel, w_hwio)                     # (Kh, w_in, Cin, w_out, Cout)
    return wt.reshape(K, w_in * Cin, w_out * Cout)


def _channel_fold(w_out, c_out):
    """0/1 matrix A with A[i, j] = 1 iff i % c_out == j % c_out (per-channel lane fold)."""
    i = jnp.arange(w_out * c_out)
    return (i[:, None] % c_out == i[None, :] % c_out).astype(jnp.float32)


def double_base_conv(x_nchw, params, *, stride=1, padding=1, eps=1e-5):
    """DoubleBaseConv forward. Input/output NCHW (PyTorch convention)."""
    assert stride == 1  # TODO(synk): general stride needs strided Toeplitz/row-slab construction
    N, Cin, H, W = x_nchw.shape
    w1, w2 = params["w1"], params["w2"]
    C1, Cin_w, K, K2 = w1.shape
    assert Cin == Cin_w and K == K2
    C2 = w2.shape[0]

    H1 = H + 2 * padding - K + 1
    W1 = W + 2 * padding - K + 1
    H2 = H1 + 2 * padding - K + 1
    W2 = W1 + 2 * padding - K + 1

    # Input: NCHW -> lane-dense (N, H, W*Cin) slab, bf16 (halves DMA, native MXU operand).
    x_slab = jnp.transpose(x_nchw, (0, 2, 3, 1)).reshape(N, H, W * Cin).astype(jnp.bfloat16)
    # Conv weights as per-kh width-Toeplitz matmul operands, bf16.
    wt1 = _toeplitz_weight(w1.astype(jnp.float32), W, W1, padding).astype(jnp.bfloat16)
    wt2 = _toeplitz_weight(w2.astype(jnp.float32), W1, W2, padding).astype(jnp.bfloat16)
    # BN affine params lane-tiled to (1, Wo*Co); BN math stays f32 in-kernel.
    g1l = jnp.tile(params["g1"].reshape(1, C1).astype(jnp.float32), (1, W1))
    b1l = jnp.tile(params["b1"].reshape(1, C1).astype(jnp.float32), (1, W1))
    g2l = jnp.tile(params["g2"].reshape(1, C2).astype(jnp.float32), (1, W2))
    b2l = jnp.tile(params["b2"].reshape(1, C2).astype(jnp.float32), (1, W2))
    # Per-channel fold matrices for the MXU-side BN reduction.
    a1 = _channel_fold(W1, C1)
    a2 = _channel_fold(W2, C2)

    kern = functools.partial(_double_conv_bn_relu_kernel, K=K, pad=padding, H=H,
                             H1=H1, W1=W1, C1=C1, H2=H2, W2=W2, C2=C2, eps=eps)

    # TODO(synk): at real sizes, tile the grid over N / output-row slabs ("parallel" for the v7x
    # second core) with a two-pass BN (partial sum/sumsq, then normalize); at this toy size a
    # single block is correct and tiling would be pure overhead.
    out2d = pl.pallas_call(
        kern,
        out_shape=jax.ShapeDtypeStruct((N * H2, W2 * C2), jnp.float32),
        grid=(1,),
        in_specs=[
            pl.BlockSpec(x_slab.shape, lambda i: (0, 0, 0)),
            pl.BlockSpec(wt1.shape, lambda i: (0, 0, 0)),
            pl.BlockSpec(g1l.shape, lambda i: (0, 0)),
            pl.BlockSpec(b1l.shape, lambda i: (0, 0)),
            pl.BlockSpec(a1.shape, lambda i: (0, 0)),
            pl.BlockSpec(wt2.shape, lambda i: (0, 0, 0)),
            pl.BlockSpec(g2l.shape, lambda i: (0, 0)),
            pl.BlockSpec(b2l.shape, lambda i: (0, 0)),
            pl.BlockSpec(a2.shape, lambda i: (0, 0)),
        ],
        out_specs=pl.BlockSpec((N * H2, W2 * C2), lambda i: (0, 0)),
        scratch_shapes=[
            pltpu.VMEM((N, H + 2 * padding, W * Cin), jnp.float32),
            pltpu.VMEM((N, H1 + 2 * padding, W1 * C1), jnp.float32),
        ],
        compiler_params=pltpu.CompilerParams(
            dimension_semantics=("arbitrary",),
            # Actual need is << 1 MiB; keep the limit far below v7x's 64 MiB physical VMEM.
            vmem_limit_bytes=16 << 20,
        ),
    )(x_slab, wt1, g1l, b1l, a1, wt2, g2l, b2l, a2)

    # Lane-dense slab -> NHWC -> NCHW (layout plumbing in the wrapper, not the kernel).
    return jnp.transpose(out2d.reshape(N, H2, W2, C2), (0, 3, 1, 2))


# --------------------------------------------------------------------------------------
# Pure-JAX f32 reference (correctness sanity check)
# --------------------------------------------------------------------------------------
def _ref_conv_bn_relu(x_nchw, w, gamma, beta, stride, padding, eps=1e-5):
    y = jax.lax.conv_general_dilated(
        x_nchw.astype(jnp.float32), w.astype(jnp.float32),
        window_strides=(stride, stride),
        padding=[(padding, padding), (padding, padding)],
        dimension_numbers=("NCHW", "OIHW", "NCHW"))
    mean = jnp.mean(y, axis=(0, 2, 3), keepdims=True)
    var = jnp.mean((y - mean) ** 2, axis=(0, 2, 3), keepdims=True)
    y = (y - mean) * jax.lax.rsqrt(var + eps)
    y = y * gamma.reshape(1, -1, 1, 1) + beta.reshape(1, -1, 1, 1)
    return jnp.maximum(y, 0.0)


def _ref_double_base_conv(x_nchw, params, *, stride=1, padding=1):
    y = _ref_conv_bn_relu(x_nchw, params["w1"], params["g1"], params["b1"], stride, padding)
    y = _ref_conv_bn_relu(y, params["w2"], params["g2"], params["b2"], stride, padding)
    return y


def _init_params(key, in_channels, out_channels, kernel_size):
    """Deterministic init mirroring PyTorch defaults (kaiming-uniform conv, BN gamma=1, beta=0)."""
    k1, k2 = jax.random.split(key)
    fan_in1 = in_channels * kernel_size * kernel_size
    fan_in2 = out_channels * kernel_size * kernel_size
    b1 = 1.0 / jnp.sqrt(fan_in1)
    b2 = 1.0 / jnp.sqrt(fan_in2)
    return {
        "w1": jax.random.uniform(k1, (out_channels, in_channels, kernel_size, kernel_size),
                                 jnp.float32, -b1, b1),
        "g1": jnp.ones((out_channels,), jnp.float32),
        "b1": jnp.zeros((out_channels,), jnp.float32),
        "w2": jax.random.uniform(k2, (out_channels, out_channels, kernel_size, kernel_size),
                                 jnp.float32, -b2, b2),
        "g2": jnp.ones((out_channels,), jnp.float32),
        "b2": jnp.zeros((out_channels,), jnp.float32),
    }


if __name__ == "__main__":
    key = jax.random.PRNGKey(0)
    kx, kp = jax.random.split(key)

    # DoubleBaseConv(in_channels=4, out_channels=8, kernel_size=3, stride=1, padding=1)
    N, Cin, H, W = 2, 4, 16, 16
    Cout, K, stride, padding = 8, 3, 1, 1

    x = jax.random.normal(kx, (N, Cin, H, W), jnp.float32)     # NCHW, like PyTorch
    params = _init_params(kp, Cin, Cout, K)

    out = double_base_conv(x, params, stride=stride, padding=padding)
    out = jax.block_until_ready(out)

    ref = _ref_double_base_conv(x, params, stride=stride, padding=padding)
    assert out.shape == (N, Cout, H, W), out.shape
    # Tolerance reflects bf16 MXU operands (f32 accumulation) in both conv layers vs. an
    # all-f32 reference; post-BN activations are ~unit scale, so 5e-2 still catches layout bugs.
    max_err = float(jnp.max(jnp.abs(out - ref)))
    assert jnp.allclose(out, ref, rtol=5e-2, atol=5e-2), max_err

    print("KERNEL_OK")
</pallas_src>

<mosaic_0001>
module attributes {stable_mosaic.version = 11 : i64} {
  func.func @_double_conv_bn_relu_kernel(%arg0: i32, %arg1: memref<2x16x64xbf16, #tpu.memory_space<vmem>>, %arg2: memref<3x64x128xbf16, #tpu.memory_space<vmem>>, %arg3: memref<1x128xf32, #tpu.memory_space<vmem>>, %arg4: memref<1x128xf32, #tpu.memory_space<vmem>>, %arg5: memref<128x128xf32, #tpu.memory_space<vmem>>, %arg6: memref<3x128x128xbf16, #tpu.memory_space<vmem>>, %arg7: memref<1x128xf32, #tpu.memory_space<vmem>>, %arg8: memref<1x128xf32, #tpu.memory_space<vmem>>, %arg9: memref<128x128xf32, #tpu.memory_space<vmem>>, %arg10: memref<32x128xf32, #tpu.memory_space<vmem>>, %arg11: memref<2x18x64xf32, #tpu.memory_space<vmem>>, %arg12: memref<2x18x128xf32, #tpu.memory_space<vmem>>) attributes {dimension_semantics = [#tpu.dimension_semantics<arbitrary>], iteration_bounds = array<i64: 1>, scalar_prefetch = 0 : i64, scratch_operands = 2 : i64, tpu.core_type = #tpu.core_type<tc>, window_params = [{pipeline_mode = #tpu.pipeline_mode<synchronous>, transform_indices = @transform_0, window_bounds = array<i64: 2, 16, 64>}, {pipeline_mode = #tpu.pipeline_mode<synchronous>, transform_indices = @transform_1, window_bounds = array<i64: 3, 64, 128>}, {pipeline_mode = #tpu.pipeline_mode<synchronous>, transform_indices = @transform_2, window_bounds = array<i64: 1, 128>}, {pipeline_mode = #tpu.pipeline_mode<synchronous>, transform_indices = @transform_3, window_bounds = array<i64: 1, 128>}, {pipeline_mode = #tpu.pipeline_mode<synchronous>, transform_indices = @transform_4, window_bounds = array<i64: 128, 128>}, {pipeline_mode = #tpu.pipeline_mode<synchronous>, transform_indices = @transform_5, window_bounds = array<i64: 3, 128, 128>}, {pipeline_mode = #tpu.pipeline_mode<synchronous>, transform_indices = @transform_6, window_bounds = array<i64: 1, 128>}, {pipeline_mode = #tpu.pipeline_mode<synchronous>, transform_indices = @transform_7, window_bounds = array<i64: 1, 128>}, {pipeline_mode = #tpu.pipeline_mode<synchronous>, transform_indices = @transform_8, window_bounds = array<i64: 128, 128>}, {pipeline_mode = #tpu.pipeline_mode<synchronous>, transform_indices = @transform_9, window_bounds = array<i64: 32, 128>}]} {
    %cst = arith.constant 0.000000e+00 : f32
    %0 = vector.broadcast %cst : f32 to vector<2x1x64xf32>
    %c0 = arith.constant 0 : index
    %c0_0 = arith.constant 0 : index
    %c0_1 = arith.constant 0 : index
    %1 = vector.load %arg11[%c0, %c0_0, %c0_1] : memref<2x18x64xf32, #tpu.memory_space<vmem>>, vector<2x1x64xf32>
    tpu.vector_store %arg11[%c0, %c0_0, %c0_1], %0 {strides = array<i32>} : memref<2x18x64xf32, #tpu.memory_space<vmem>>, vector<2x1x64xf32>,
    %c0_2 = arith.constant 0 : index
    %c17 = arith.constant 17 : index
    %c0_3 = arith.constant 0 : index
    %2 = vector.load %arg11[%c0_2, %c17, %c0_3] : memref<2x18x64xf32, #tpu.memory_space<vmem>>, vector<2x1x64xf32>
    tpu.vector_store %arg11[%c0_2, %c17, %c0_3], %0 {strides = array<i32>} : memref<2x18x64xf32, #tpu.memory_space<vmem>>, vector<2x1x64xf32>,
    %c0_4 = arith.constant 0 : index
    %c0_5 = arith.constant 0 : index
    %c0_6 = arith.constant 0 : index
    %3 = vector.load %arg1[%c0_4, %c0_5, %c0_6] : memref<2x16x64xbf16, #tpu.memory_space<vmem>>, vector<2x16x64xbf16>
    %4 = arith.extf %3 : vector<2x16x64xbf16> to vector<2x16x64xf32>
    %c0_7 = arith.constant 0 : index
    %c1 = arith.constant 1 : index
    %c0_8 = arith.constant 0 : index
    %5 = vector.load %arg11[%c0_7, %c1, %c0_8] : memref<2x18x64xf32, #tpu.memory_space<vmem>>, vector<2x16x64xf32>
    tpu.vector_store %arg11[%c0_7, %c1, %c0_8], %4 {strides = array<i32>} : memref<2x18x64xf32, #tpu.memory_space<vmem>>, vector<2x16x64xf32>,
    %cst_9 = arith.constant 0.000000e+00 : f32
    %6 = vector.broadcast %cst_9 : f32 to vector<32x128xf32>
    %c0_10 = arith.constant 0 : index
    %c0_11 = arith.constant 0 : index
    %c0_12 = arith.constant 0 : index
    %7 = vector.load %arg11[%c0_10, %c0_11, %c0_12] : memref<2x18x64xf32, #tpu.memory_space<vmem>>, vector<2x16x64xf32>
    %8 = vector.shape_cast %7 : vector<2x16x64xf32> to vector<32x64xf32>
    %9 = arith.truncf %8 : vector<32x64xf32> to vector<32x64xbf16>
    %c0_13 = arith.constant 0 : index
    %c0_14 = arith.constant 0 : index
    %c0_15 = arith.constant 0 : index
    %10 = vector.load %arg2[%c0_13, %c0_14, %c0_15] : memref<3x64x128xbf16, #tpu.memory_space<vmem>>, vector<1x64x128xbf16>
    %11 = vector.shape_cast %10 : vector<1x64x128xbf16> to vector<64x128xbf16>
    %cst_16 = arith.constant dense<0.000000e+00> : vector<32x128xf32>
    %12 = tpu.matmul %9, %11, %cst_16 {dimension_numbers = #tpu.dot_dimension_numbers<[1], [0], [0], [1], [0, 0, 1, 1], [], []>} : vector<32x64xbf16>, vector<64x128xbf16>, vector<32x128xf32> -> vector<32x128xf32>
    %13 = arith.addf %6, %12 : vector<32x128xf32>
    %c0_17 = arith.constant 0 : index
    %c1_18 = arith.constant 1 : index
    %c0_19 = arith.constant 0 : index
    %14 = vector.load %arg11[%c0_17, %c1_18, %c0_19] : memref<2x18x64xf32, #tpu.memory_space<vmem>>, vector<2x16x64xf32>
    %15 = vector.shape_cast %14 : vector<2x16x64xf32> to vector<32x64xf32>
    %16 = arith.truncf %15 : vector<32x64xf32> to vector<32x64xbf16>
    %c1_20 = arith.constant 1 : index
    %c0_21 = arith.constant 0 : index
    %c0_22 = arith.constant 0 : index
    %17 = vector.load %arg2[%c1_20, %c0_21, %c0_22] : memref<3x64x128xbf16, #tpu.memory_space<vmem>>, vector<1x64x128xbf16>
    %18 = vector.shape_cast %17 : vector<1x64x128xbf16> to vector<64x128xbf16>
    %cst_23 = arith.constant dense<0.000000e+00> : vector<32x128xf32>
    %19 = tpu.matmul %16, %18, %cst_23 {dimension_numbers = #tpu.dot_dimension_numbers<[1], [0], [0], [1], [0, 0, 1, 1], [], []>} : vector<32x64xbf16>, vector<64x128xbf16>, vector<32x128xf32> -> vector<32x128xf32>
    %20 = arith.addf %13, %19 : vector<32x128xf32>
    %c0_24 = arith.constant 0 : index
    %c2 = arith.constant 2 : index
    %c0_25 = arith.constant 0 : index
    %21 = vector.load %arg11[%c0_24, %c2, %c0_25] : memref<2x18x64xf32, #tpu.memory_space<vmem>>, vector<2x16x64xf32>
    %22 = vector.shape_cast %21 : vector<2x16x64xf32> to vector<32x64xf32>
    %23 = arith.truncf %22 : vector<32x64xf32> to vector<32x64xbf16>
    %c2_26 = arith.constant 2 : index
    %c0_27 = arith.constant 0 : index
    %c0_28 = arith.constant 0 : index
    %24 = vector.load %arg2[%c2_26, %c0_27, %c0_28] : memref<3x64x128xbf16, #tpu.memory_space<vmem>>, vector<1x64x128xbf16>
    %25 = vector.shape_cast %24 : vector<1x64x128xbf16> to vector<64x128xbf16>
    %cst_29 = arith.constant dense<0.000000e+00> : vector<32x128xf32>
    %26 = tpu.matmul %23, %25, %cst_29 {dimension_numbers = #tpu.dot_dimension_numbers<[1], [0], [0], [1], [0, 0, 1, 1], [], []>} : vector<32x64xbf16>, vector<64x128xbf16>, vector<32x128xf32> -> vector<32x128xf32>
    %27 = arith.addf %20, %26 : vector<32x128xf32>
    %cst_30 = arith.constant 0.001953125 : f32
    %28 = vector.broadcast %cst_30 : f32 to vector<1x32xf32>
    %29 = arith.mulf %27, %27 : vector<32x128xf32>
    %30 = tpu.concatenate %27, %29 in 1 : vector<32x128xf32>, vector<32x128xf32> -> vector<32x256xf32>
    %cst_31 = arith.constant dense<0.000000e+00> : vector<1x256xf32>
    %31 = tpu.matmul %28, %30, %cst_31 {dimension_numbers = #tpu.dot_dimension_numbers<[1], [0], [0], [1], [0, 0, 1, 1], [], []>} : vector<1x32xf32>, vector<32x256xf32>, vector<1x256xf32> -> vector<1x256xf32>
    %32 = vector.extract_strided_slice %31 {offsets = [0, 0], sizes = [1, 128], strides = [1, 1]} : vector<1x256xf32> to vector<1x128xf32>
    %c0_32 = arith.constant 0 : index
    %c0_33 = arith.constant 0 : index
    %33 = vector.load %arg5[%c0_32, %c0_33] : memref<128x128xf32, #tpu.memory_space<vmem>>, vector<128x128xf32>
    %cst_34 = arith.constant dense<0.000000e+00> : vector<1x128xf32>
    %34 = tpu.matmul %32, %33, %cst_34 {dimension_numbers = #tpu.dot_dimension_numbers<[1], [0], [0], [1], [0, 0, 1, 1], [], []>} : vector<1x128xf32>, vector<128x128xf32>, vector<1x128xf32> -> vector<1x128xf32>
    %35 = vector.extract_strided_slice %31 {offsets = [0, 128], sizes = [1, 128], strides = [1, 1]} : vector<1x256xf32> to vector<1x128xf32>
    %c0_35 = arith.constant 0 : index
    %c0_36 = arith.constant 0 : index
    %36 = vector.load %arg5[%c0_35, %c0_36] : memref<128x128xf32, #tpu.memory_space<vmem>>, vector<128x128xf32>
    %cst_37 = arith.constant dense<0.000000e+00> : vector<1x128xf32>
    %37 = tpu.matmul %35, %36, %cst_37 {dimension_numbers = #tpu.dot_dimension_numbers<[1], [0], [0], [1], [0, 0, 1, 1], [], []>} : vector<1x128xf32>, vector<128x128xf32>, vector<1x128xf32> -> vector<1x128xf32>
    %38 = arith.mulf %34, %34 : vector<1x128xf32>
    %39 = arith.subf %37, %38 : vector<1x128xf32>
    %c0_38 = arith.constant 0 : index
    %c0_39 = arith.constant 0 : index
    %40 = vector.load %arg3[%c0_38, %c0_39] : memref<1x128xf32, #tpu.memory_space<vmem>>, vector<1x128xf32>
    %cst_40 = arith.constant 9.99999974E-6 : f32
    %41 = vector.broadcast %cst_40 : f32 to vector<1x128xf32>
    %42 = arith.addf %39, %41 : vector<1x128xf32>
    %43 = math.rsqrt %42 : vector<1x128xf32>
    %44 = arith.mulf %40, %43 : vector<1x128xf32>
    %c0_41 = arith.constant 0 : index
    %c0_42 = arith.constant 0 : index
    %45 = vector.load %arg4[%c0_41, %c0_42] : memref<1x128xf32, #tpu.memory_space<vmem>>, vector<1x128xf32>
    %46 = arith.mulf %34, %44 : vector<1x128xf32>
    %47 = arith.subf %45, %46 : vector<1x128xf32>
    %48 = vector.broadcast %44 : vector<1x128xf32> to vector<32x128xf32>
    %49 = arith.mulf %27, %48 : vector<32x128xf32>
    %50 = vector.broadcast %47 : vector<1x128xf32> to vector<32x128xf32>
    %51 = arith.addf %49, %50 : vector<32x128xf32>
    %cst_43 = arith.constant 0.000000e+00 : f32
    %52 = vector.broadcast %cst_43 : f32 to vector<32x128xf32>
    %53 = arith.maximumf %51, %52 : vector<32x128xf32>
    %cst_44 = arith.constant 0.000000e+00 : f32
    %54 = vector.broadcast %cst_44 : f32 to vector<2x1x128xf32>
    %c0_45 = arith.constant 0 : index
    %c0_46 = arith.constant 0 : index
    %c0_47 = arith.constant 0 : index
    %55 = vector.load %arg12[%c0_45, %c0_46, %c0_47] : memref<2x18x128xf32, #tpu.memory_space<vmem>>, vector<2x1x128xf32>
    tpu.vector_store %arg12[%c0_45, %c0_46, %c0_47], %54 {strides = array<i32>} : memref<2x18x128xf32, #tpu.memory_space<vmem>>, vector<2x1x128xf32>,
    %c0_48 = arith.constant 0 : index
    %c17_49 = arith.constant 17 : index
    %c0_50 = arith.constant 0 : index
    %56 = vector.load %arg12[%c0_48, %c17_49, %c0_50] : memref<2x18x128xf32, #tpu.memory_space<vmem>>, vector<2x1x128xf32>
    tpu.vector_store %arg12[%c0_48, %c17_49, %c0_50], %54 {strides = array<i32>} : memref<2x18x128xf32, #tpu.memory_space<vmem>>, vector<2x1x128xf32>,
    %57 = vector.shape_cast %53 : vector<32x128xf32> to vector<2x16x128xf32>
    %c0_51 = arith.constant 0 : index
    %c1_52 = arith.constant 1 : index
    %c0_53 = arith.constant 0 : index
    %58 = vector.load %arg12[%c0_51, %c1_52, %c0_53] : memref<2x18x128xf32, #tpu.memory_space<vmem>>, vector<2x16x128xf32>
    tpu.vector_store %arg12[%c0_51, %c1_52, %c0_53], %57 {strides = array<i32>} : memref<2x18x128xf32, #tpu.memory_space<vmem>>, vector<2x16x128xf32>,
    %cst_54 = arith.constant 0.000000e+00 : f32
    %59 = vector.broadcast %cst_54 : f32 to vector<32x128xf32>
    %c0_55 = arith.constant 0 : index
    %c0_56 = arith.constant 0 : index
    %c0_57 = arith.constant 0 : index
    %60 = vector.load %arg12[%c0_55, %c0_56, %c0_57] : memref<2x18x128xf32, #tpu.memory_space<vmem>>, vector<2x16x128xf32>
    %61 = vector.shape_cast %60 : vector<2x16x128xf32> to vector<32x128xf32>
    %62 = arith.truncf %61 : vector<32x128xf32> to vector<32x128xbf16>
    %c0_58 = arith.constant 0 : index
    %c0_59 = arith.constant 0 : index
    %c0_60 = arith.constant 0 : index
    %63 = vector.load %arg6[%c0_58, %c0_59, %c0_60] : memref<3x128x128xbf16, #tpu.memory_space<vmem>>, vector<1x128x128xbf16>
    %64 = vector.shape_cast %63 : vector<1x128x128xbf16> to vector<128x128xbf16>
    %cst_61 = arith.constant dense<0.000000e+00> : vector<32x128xf32>
    %65 = tpu.matmul %62, %64, %cst_61 {dimension_numbers = #tpu.dot_dimension_numbers<[1], [0], [0], [1], [0, 0, 1, 1], [], []>} : vector<32x128xbf16>, vector<128x128xbf16>, vector<32x128xf32> -> vector<32x128xf32>
    %66 = arith.addf %59, %65 : vector<32x128xf32>
    %c0_62 = arith.constant 0 : index
    %c1_63 = arith.constant 1 : index
    %c0_64 = arith.constant 0 : index
    %67 = vector.load %arg12[%c0_62, %c1_63, %c0_64] : memref<2x18x128xf32, #tpu.memory_space<vmem>>, vector<2x16x128xf32>
    %68 = vector.shape_cast %67 : vector<2x16x128xf32> to vector<32x128xf32>
    %69 = arith.truncf %68 : vector<32x128xf32> to vector<32x128xbf16>
    %c1_65 = arith.constant 1 : index
    %c0_66 = arith.constant 0 : index
    %c0_67 = arith.constant 0 : index
    %70 = vector.load %arg6[%c1_65, %c0_66, %c0_67] : memref<3x128x128xbf16, #tpu.memory_space<vmem>>, vector<1x128x128xbf16>
    %71 = vector.shape_cast %70 : vector<1x128x128xbf16> to vector<128x128xbf16>
    %cst_68 = arith.constant dense<0.000000e+00> : vector<32x128xf32>
    %72 = tpu.matmul %69, %71, %cst_68 {dimension_numbers = #tpu.dot_dimension_numbers<[1], [0], [0], [1], [0, 0, 1, 1], [], []>} : vector<32x128xbf16>, vector<128x128xbf16>, vector<32x128xf32> -> vector<32x128xf32>
    %73 = arith.addf %66, %72 : vector<32x128xf32>
    %c0_69 = arith.constant 0 : index
    %c2_70 = arith.constant 2 : index
    %c0_71 = arith.constant 0 : index
    %74 = vector.load %arg12[%c0_69, %c2_70, %c0_71] : memref<2x18x128xf32, #tpu.memory_space<vmem>>, vector<2x16x128xf32>
    %75 = vector.shape_cast %74 : vector<2x16x128xf32> to vector<32x128xf32>
    %76 = arith.truncf %75 : vector<32x128xf32> to vector<32x128xbf16>
    %c2_72 = arith.constant 2 : index
    %c0_73 = arith.constant 0 : index
    %c0_74 = arith.constant 0 : index
    %77 = vector.load %arg6[%c2_72, %c0_73, %c0_74] : memref<3x128x128xbf16, #tpu.memory_space<vmem>>, vector<1x128x128xbf16>
    %78 = vector.shape_cast %77 : vector<1x128x128xbf16> to vector<128x128xbf16>
    %cst_75 = arith.constant dense<0.000000e+00> : vector<32x128xf32>
    %79 = tpu.matmul %76, %78, %cst_75 {dimension_numbers = #tpu.dot_dimension_numbers<[1], [0], [0], [1], [0, 0, 1, 1], [], []>} : vector<32x128xbf16>, vector<128x128xbf16>, vector<32x128xf32> -> vector<32x128xf32>
    %80 = arith.addf %73, %79 : vector<32x128xf32>
    %cst_76 = arith.constant 0.001953125 : f32
    %81 = vector.broadcast %cst_76 : f32 to vector<1x32xf32>
    %82 = arith.mulf %80, %80 : vector<32x128xf32>
    %83 = tpu.concatenate %80, %82 in 1 : vector<32x128xf32>, vector<32x128xf32> -> vector<32x256xf32>
    %cst_77 = arith.constant dense<0.000000e+00> : vector<1x256xf32>
    %84 = tpu.matmul %81, %83, %cst_77 {dimension_numbers = #tpu.dot_dimension_numbers<[1], [0], [0], [1], [0, 0, 1, 1], [], []>} : vector<1x32xf32>, vector<32x256xf32>, vector<1x256xf32> -> vector<1x256xf32>
    %85 = vector.extract_strided_slice %84 {offsets = [0, 0], sizes = [1, 128], strides = [1, 1]} : vector<1x256xf32> to vector<1x128xf32>
    %c0_78 = arith.constant 0 : index
    %c0_79 = arith.constant 0 : index
    %86 = vector.load %arg9[%c0_78, %c0_79] : memref<128x128xf32, #tpu.memory_space<vmem>>, vector<128x128xf32>
    %cst_80 = arith.constant dense<0.000000e+00> : vector<1x128xf32>
    %87 = tpu.matmul %85, %86, %cst_80 {dimension_numbers = #tpu.dot_dimension_numbers<[1], [0], [0], [1], [0, 0, 1, 1], [], []>} : vector<1x128xf32>, vector<128x128xf32>, vector<1x128xf32> -> vector<1x128xf32>
    %88 = vector.extract_strided_slice %84 {offsets = [0, 128], sizes = [1, 128], strides = [1, 1]} : vector<1x256xf32> to vector<1x128xf32>
    %c0_81 = arith.constant 0 : index
    %c0_82 = arith.constant 0 : index
    %89 = vector.load %arg9[%c0_81, %c0_82] : memref<128x128xf32, #tpu.memory_space<vmem>>, vector<128x128xf32>
    %cst_83 = arith.constant dense<0.000000e+00> : vector<1x128xf32>
    %90 = tpu.matmul %88, %89, %cst_83 {dimension_numbers = #tpu.dot_dimension_numbers<[1], [0], [0], [1], [0, 0, 1, 1], [], []>} : vector<1x128xf32>, vector<128x128xf32>, vector<1x128xf32> -> vector<1x128xf32>
    %91 = arith.mulf %87, %87 : vector<1x128xf32>
    %92 = arith.subf %90, %91 : vector<1x128xf32>
    %c0_84 = arith.constant 0 : index
    %c0_85 = arith.constant 0 : index
    %93 = vector.load %arg7[%c0_84, %c0_85] : memref<1x128xf32, #tpu.memory_space<vmem>>, vector<1x128xf32>
    %cst_86 = arith.constant 9.99999974E-6 : f32
    %94 = vector.broadcast %cst_86 : f32 to vector<1x128xf32>
    %95 = arith.addf %92, %94 : vector<1x128xf32>
    %96 = math.rsqrt %95 : vector<1x128xf32>
    %97 = arith.mulf %93, %96 : vector<1x128xf32>
    %c0_87 = arith.constant 0 : index
    %c0_88 = arith.constant 0 : index
    %98 = vector.load %arg8[%c0_87, %c0_88] : memref<1x128xf32, #tpu.memory_space<vmem>>, vector<1x128xf32>
    %99 = arith.mulf %87, %97 : vector<1x128xf32>
    %100 = arith.subf %98, %99 : vector<1x128xf32>
    %101 = vector.broadcast %97 : vector<1x128xf32> to vector<32x128xf32>
    %102 = arith.mulf %80, %101 : vector<32x128xf32>
    %103 = vector.broadcast %100 : vector<1x128xf32> to vector<32x128xf32>
    %104 = arith.addf %102, %103 : vector<32x128xf32>
    %cst_89 = arith.constant 0.000000e+00 : f32
    %105 = vector.broadcast %cst_89 : f32 to vector<32x128xf32>
    %106 = arith.maximumf %104, %105 : vector<32x128xf32>
    %c0_90 = arith.constant 0 : index
    %c0_91 = arith.constant 0 : index
    %107 = vector.load %arg10[%c0_90, %c0_91] : memref<32x128xf32, #tpu.memory_space<vmem>>, vector<32x128xf32>
    tpu.vector_store %arg10[%c0_90, %c0_91], %106 {strides = array<i32>} : memref<32x128xf32, #tpu.memory_space<vmem>>, vector<32x128xf32>,
    return
  }
  func.func @transform_0(%arg0: i32) -> (i32, i32, i32) {
    %c0_i32 = arith.constant 0 : i32
    %c0_i32_0 = arith.constant 0 : i32
    %c0_i32_1 = arith.constant 0 : i32
    %c0_i32_2 = arith.constant 0 : i32
    return %c0_i32, %c0_i32_0, %c0_i32_1 : i32, i32, i32
  }
  func.func @transform_1(%arg0: i32) -> (i32, i32, i32) {
    %c0_i32 = arith.constant 0 : i32
    %c0_i32_0 = arith.constant 0 : i32
    %c0_i32_1 = arith.constant 0 : i32
    %c0_i32_2 = arith.constant 0 : i32
    return %c0_i32, %c0_i32_0, %c0_i32_1 : i32, i32, i32
  }
  func.func @transform_2(%arg0: i32) -> (i32, i32) {
    %c0_i32 = arith.constant 0 : i32
    %c0_i32_0 = arith.constant 0 : i32
    %c0_i32_1 = arith.constant 0 : i32
    return %c0_i32, %c0_i32_0 : i32, i32
  }
  func.func @transform_3(%arg0: i32) -> (i32, i32) {
    %c0_i32 = arith.constant 0 : i32
    %c0_i32_0 = arith.constant 0 : i32
    %c0_i32_1 = arith.constant 0 : i32
    return %c0_i32, %c0_i32_0 : i32, i32
  }
  func.func @transform_4(%arg0: i32) -> (i32, i32) {
    %c0_i32 = arith.constant 0 : i32
    %c0_i32_0 = arith.constant 0 : i32
    %c0_i32_1 = arith.constant 0 : i32
    return %c0_i32, %c0_i32_0 : i32, i32
  }
  func.func @transform_5(%arg0: i32) -> (i32, i32, i32) {
    %c0_i32 = arith.constant 0 : i32
    %c0_i32_0 = arith.constant 0 : i32
    %c0_i32_1 = arith.constant 0 : i32
    %c0_i32_2 = arith.constant 0 : i32
    return %c0_i32, %c0_i32_0, %c0_i32_1 : i32, i32, i32
  }
  func.func @transform_6(%arg0: i32) -> (i32, i32) {
    %c0_i32 = arith.constant 0 : i32
    %c0_i32_0 = arith.constant 0 : i32
    %c0_i32_1 = arith.constant 0 : i32
    return %c0_i32, %c0_i32_0 : i32, i32
  }
  func.func @transform_7(%arg0: i32) -> (i32, i32) {
    %c0_i32 = arith.constant 0 : i32
    %c0_i32_0 = arith.constant 0 : i32
    %c0_i32_1 = arith.constant 0 : i32
    return %c0_i32, %c0_i32_0 : i32, i32
  }
  func.func @transform_8(%arg0: i32) -> (i32, i32) {
    %c0_i32 = arith.constant 0 : i32
    %c0_i32_0 = arith.constant 0 : i32
    %c0_i32_1 = arith.constant 0 : i32
    return %c0_i32, %c0_i32_0 : i32, i32
  }
  func.func @transform_9(%arg0: i32) -> (i32, i32) {
    %c0_i32 = arith.constant 0 : i32
    %c0_i32_0 = arith.constant 0 : i32
    %c0_i32_1 = arith.constant 0 : i32
    return %c0_i32, %c0_i32_0 : i32, i32
  }
}

</mosaic_0001>

<bundles_post_ra>
// kernel: tpu_custom_call.1
= control target key start
LH: loop header
LB: loop body
LE: loop exit
PB: predicated region body
PF: predicated region fallthrough
CT: control target
= control target key end

     0   :  { %14 = vsyncpa [#allocation5], 0  ;;  %s2356_s0 = inlined_call_operand.hbm [shape: bf16[2,16,64], index: 0, kind: input, shape index: {}]   ;;  %s2357_s1 = inlined_call_operand.hbm [shape: bf16[3,64,128], index: 1, kind: input, shape index: {}]   ;;  %s2358_s2 = inlined_call_operand.vmem [shape: f32[1,128], index: 2, kind: input, shape index: {}]   ;;  %s2359_s3 = inlined_call_operand.vmem [shape: f32[1,128], index: 3, kind: input, shape index: {}]   ;;  %s2360_s4 = inlined_call_operand.hbm [shape: f32[128,128], index: 4, kind: input, shape index: {}]   ;;  %s2361_s5 = inlined_call_operand.hbm [shape: bf16[3,128,128], index: 5, kind: input, shape index: {}]   ;;  %s2362_s6 = inlined_call_operand.vmem [shape: f32[1,128], index: 6, kind: input, shape index: {}]   ;;  %s2363_s7 = inlined_call_operand.vmem [shape: f32[1,128], index: 7, kind: input, shape index: {}]   ;;  %s2364_s8 = inlined_call_operand.hbm [shape: f32[128,128], index: 8, kind: input, shape index: {}]   ;;  %s2365_s9 = inlined_call_operand.hbm [shape: f32[32,128], index: 9, kind: output, shape index: {}]  }
   0x1   :  { %15 = vsyncpa [#allocation8], 0 }
   0x2   :  { %16 = vsyncpa [#allocation11], 0 }
   0x3   :  { %17 = vsyncpa [#allocation6], 0  ;;  %s2058_s30 = smov [#allocation7]   ;;  %s2059_s11 = smov [#allocation10]  }
   0x4   :  { %s35_s10 = sshll.u32 %s2058_s30, 4  ;;  %s63_s12 = sshll.u32 %s2059_s11, 4  ;;  %s36_s10 = int_to_ptr.vmem [resolvable:$true] %s35_s10  ;;  %s2122_s12 = int_to_ptr.vmem [resolvable:$true] %s63_s12 }
   0x5   :  { %s1918_s15 = scalar_lea.hbm %s2357_s1, 1536 }
   0x6   :  { %p1919_p0 = scmp.ne.s32.totalorder %s2357_s1, %s1918_s15  ;;  %p1922_p1 = scmp.lt.u32.totalorder %s1918_s15, %s2357_s1 }
   0x8   :  { %p1924_p2 = pnand %p1922_p1, %p1919_p0 }
   0xa   :  { %1927 = shalt.err (!%p1924_p2)
}
   0xb   :  { %s1928_s20 = scalar_lea.vmem %s36_s10, 1536  ;;  %p1933_p4 = scmp.lt.s32.totalorder %s36_s10, %s36_s10 }
   0xc   :  { %p1929_p3 = scmp.ne.s32.totalorder %s36_s10, %s1928_s20  ;;  %p1934_p5 = scmp.lt.s32.totalorder %s1928_s20, %s1928_s20 }
   0xe   :  { %p1935_p6 = por %p1934_p5, %p1933_p4 }
  0x10   :  { %p1936_p7 = pnand %p1935_p6, %p1929_p3 }
  0x12   :  { %1939 = shalt.err (!%p1936_p7)
}
  0x13   :  { %s2060_s21 = smov 64   ;;  %s2061_s22 = smov 4  }
  0x14   :  { %41 = dma.hbm_to_vmem [thread:$0]  %s2357_s1, 1536, %s36_s10, [#allocation8], %s2060_s21, %s2060_s21, %s2061_s22  }
  0x15   :  { %s1940_s27 = scalar_lea.hbm %s2361_s5, 3072 }
  0x16   :  { %p1941_p8 = scmp.ne.s32.totalorder %s2361_s5, %s1940_s27  ;;  %p1944_p9 = scmp.lt.u32.totalorder %s1940_s27, %s2361_s5 }
  0x18   :  { %p1946_p10 = pnand %p1944_p9, %p1941_p8 }
  0x1a   :  { %1949 = shalt.err (!%p1946_p10)
}
  0x1b   :  { %s1950_s13 = scalar_lea.vmem %s2122_s12, 3072  ;;  %p1955_p12 = scmp.lt.s32.totalorder %s2122_s12, %s2122_s12 }
  0x1c   :  { %p1951_p11 = scmp.ne.s32.totalorder %s2122_s12, %s1950_s13  ;;  %p1956_p13 = scmp.lt.s32.totalorder %s1950_s13, %s1950_s13 }
  0x1e   :  { %p1957_p0 = por %p1956_p13, %p1955_p12 }
  0x20   :  { %p1958_p1 = pnand %p1957_p0, %p1951_p11 }
  0x22   :  { %1961 = shalt.err (!%p1958_p1)
}
  0x23   :  { %69 = dma.hbm_to_vmem [thread:$0]  %s2361_s5, 3072, %s2122_s12, [#allocation11], %s2060_s21, %s2060_s21, %s2061_s22  }
  0x24   :  { %s2062_s14 = smov [#allocation4]   ;;  %s2063_s16 = smov [#allocation9]  }
  0x25   :  { %s23_s15 = sshll.u32 %s2062_s14, 4  ;;  %s51_s17 = sshll.u32 %s2063_s16, 4  ;;  %s24_s15 = int_to_ptr.vmem [resolvable:$true] %s23_s15  ;;  %s2159_s17 = int_to_ptr.vmem [resolvable:$true] %s51_s17 }
  0x26   :  { %s1962_s20 = scalar_lea.hbm %s2356_s0, 256 }
  0x27   :  { %p1963_p2 = scmp.ne.s32.totalorder %s2356_s0, %s1962_s20  ;;  %p1966_p3 = scmp.lt.u32.totalorder %s1962_s20, %s2356_s0 }
  0x29   :  { %p1968_p4 = pnand %p1966_p3, %p1963_p2 }
  0x2b   :  { %1971 = shalt.err (!%p1968_p4)
}
  0x2c   :  { %s1972_s5 = scalar_lea.vmem %s24_s15, 256  ;;  %p1977_p6 = scmp.lt.s32.totalorder %s24_s15, %s24_s15 }
  0x2d   :  { %p1973_p5 = scmp.ne.s32.totalorder %s24_s15, %s1972_s5  ;;  %p1978_p7 = scmp.lt.s32.totalorder %s1972_s5, %s1972_s5 }
  0x2f   :  { %p1979_p8 = por %p1978_p7, %p1977_p6 }
  0x31   :  { %p1980_p9 = pnand %p1979_p8, %p1973_p5 }
  0x33   :  { %1983 = shalt.err (!%p1980_p9)
}
  0x34   :  { %29 = dma.hbm_to_vmem [thread:$0]  %s2356_s0, 256, %s24_s15, [#allocation5], %s2060_s21, %s2060_s21, %s2061_s22  }
  0x35   :  { %s1984_s30 = scalar_lea.hbm %s2360_s4, 2048 }
  0x36   :  { %p1985_p10 = scmp.ne.s32.totalorder %s2360_s4, %s1984_s30  ;;  %p1988_p11 = scmp.lt.u32.totalorder %s1984_s30, %s2360_s4 }
  0x38   :  { %p1990_p12 = pnand %p1988_p11, %p1985_p10 }
  0x3a   :  { %1993 = shalt.err (!%p1990_p12)
}
  0x3b   :  { %s1994_s14 = scalar_lea.vmem %s2159_s17, 2048  ;;  %p1999_p0 = scmp.lt.s32.totalorder %s2159_s17, %s2159_s17 }
  0x3c   :  { %p1995_p13 = scmp.ne.s32.totalorder %s2159_s17, %s1994_s14  ;;  %p2000_p1 = scmp.lt.s32.totalorder %s1994_s14, %s1994_s14 }
  0x3e   :  { %p2001_p2 = por %p2000_p1, %p1999_p0 }
  0x40   :  { %p2002_p3 = pnand %p2001_p2, %p1995_p13 }
  0x42   :  { %2005 = shalt.err (!%p2002_p3)
}
  0x43   :  { %s2064_s0 = smov 128   ;;  %s2065_s21 = smov 8  }
  0x44   :  { %57 = dma.hbm_to_vmem [thread:$0]  %s2360_s4, 2048, %s2159_s17, [#allocation8], %s2064_s0, %s2064_s0, %s2065_s21  }
  0x45   :  { %s2066_s16 = smov [#allocation12]   ;;  %s2006_s23 = scalar_lea.hbm %s2364_s8, 2048 }
  0x46   :  { %s79_s18 = sshll.u32 %s2066_s16, 4  ;;  %p2007_p4 = scmp.ne.s32.totalorder %s2364_s8, %s2006_s23  ;;  %s80_s18 = int_to_ptr.vmem [resolvable:$true] %s79_s18 }
  0x47   :  { %p2010_p5 = scmp.lt.u32.totalorder %s2006_s23, %s2364_s8 }
  0x49   :  { %p2012_p6 = pnand %p2010_p5, %p2007_p4 }
  0x4b   :  { %2015 = shalt.err (!%p2012_p6)
}
  0x4c   :  { %s2016_s12 = scalar_lea.vmem %s80_s18, 2048  ;;  %p2021_p8 = scmp.lt.s32.totalorder %s80_s18, %s80_s18 }
  0x4d   :  { %p2017_p7 = scmp.ne.s32.totalorder %s80_s18, %s2016_s12  ;;  %p2022_p9 = scmp.lt.s32.totalorder %s2016_s12, %s2016_s12 }
  0x4f   :  { %p2023_p10 = por %p2022_p9, %p2021_p8 }
  0x51   :  { %p2024_p11 = pnand %p2023_p10, %p2017_p7 }
  0x53   :  { %2027 = shalt.err (!%p2024_p11)
}
  0x54   :  { %85 = dma.hbm_to_vmem [thread:$0]  %s2364_s8, 2048, %s80_s18, [#allocation11], %s2064_s0, %s2064_s0, %s2065_s21  }
  0x55   :  { %2050 = dma.done.wait [#allocation5], 256  }
  0x56   :  { %2051 = vsyncadd [#allocation5], 4294967040 }
  0x57   :  { %2052 = dma.done.wait [#allocation8], 3584  }
  0x58   :  { %2053 = vsyncadd [#allocation8], 4294963712 }
  0x59   :  { %2054 = dma.done.wait [#allocation11], 5120  }
  0x5a   :  { %2055 = vsyncadd [#allocation11], 4294962176  ;;  %vm102_vm0 = vcmask 516096   ;;  %v2067_v0 = vmov 0.0   ;;  %v1878_v1 = vld [vmem:[#allocation7 + $0x20] sm:$0xff]   ;;  %v1879_v2 = vld [vmem:[#allocation7 + $0x28] sm:$0xff]  }
  0x5b   :  { %103 = vst.msk [vmem:[#allocation2] sm:$0x1] %vm102_vm0, %v2067_v0  ;;  %104 = vst.msk [vmem:[#allocation2 + $0x18] sm:$0x1] %vm102_vm0, %v2067_v0  ;;  %477 = vmatprep.mubr.f32.mxu1 %v2067_v0  ;;  %1500 = vmatprep.subr.bf16.mxu0 %v1878_v1  ;;  %v1880_v3 = vld [vmem:[#allocation7 + $0x30] sm:$0xff]   ;;  %vm115_vm1 = vcmask 523264  }
  0x5c   :  { %105 = vst.msk [vmem:[#allocation2 + $0x11] sm:$0x1] %vm102_vm0, %v2067_v0  ;;  %106 = vst.msk [vmem:[#allocation2 + $0x29] sm:$0x1] %vm102_vm0, %v2067_v0  ;;  %1501 = vmatpush3.bf16.msra.mxu0 %v1878_v1  ;;  %v1376_v4 = vld [vmem:[#allocation4] sm:$0xff]   ;;  %v1383_v7 = vld [vmem:[#allocation4 + $0x8] sm:$0xff]  }
  0x5d   :  { %673 = vst [vmem:[#allocation3] sm:$0x1] %v2067_v0  ;;  %674 = vst [vmem:[#allocation3 + $0x18] sm:$0x1] %v2067_v0  ;;  %1502 = vmatprep.subr.bf16.mxu0 %v1879_v2  ;;  %v1377_v5 = vunpack.c.l.bf16 %v1376_v4  ;;  %v1378_v6 = vunpack.c.h.bf16 %v1376_v4  ;;  %v1381_v8 = vunpack.c.l.bf16 %v1383_v7  ;;  %v1382_v9 = vunpack.c.h.bf16 %v1383_v7  ;;  %v1881_v10 = vld [vmem:[#allocation7 + $0x38] sm:$0xff]   ;;  %v1882_v11 = vld [vmem:[#allocation7] sm:$0xff]  }
  0x5e   :  { %675 = vst [vmem:[#allocation3 + $0x11] sm:$0x1] %v2067_v0  ;;  %676 = vst [vmem:[#allocation3 + $0x29] sm:$0x1] %v2067_v0  ;;  %v1883_v20 = vld [vmem:[#allocation7 + $0x8] sm:$0xff]   ;;  %v1884_v22 = vld [vmem:[#allocation7 + $0x10] sm:$0xff]  }
  0x5f   :  { %116 = vst.msk [vmem:[#allocation2 + $0x1] sm:$0xff] %vm115_vm1, %v1377_v5  ;;  %117 = vst.msk [vmem:[#allocation2 + $0x9] sm:$0xff] %vm115_vm1, %v1378_v6  ;;  %v1885_v23 = vld [vmem:[#allocation7 + $0x18] sm:$0xff]   ;;  %v1886_v26 = vld [vmem:[#allocation7 + $0x40] sm:$0xff]   ;;  %vm409_vm2 = vcmask 261120   ;;  %v2068_v52 = vmov 0.0|0.0  }
  0x60   :  { %1503 = vmatpush3.bf16.msra.mxu0 %v1879_v2  ;;  %118 = vst.msk [vmem:[#allocation2 + $0x19] sm:$0xff] %vm115_vm1, %v1381_v8  ;;  %119 = vst.msk [vmem:[#allocation2 + $0x21] sm:$0xff] %vm115_vm1, %v1382_v9  ;;  %v1887_v31 = vld [vmem:[#allocation7 + $0x48] sm:$0xff]   ;;  %v1888_v32 = vld [vmem:[#allocation7 + $0x50] sm:$0xff]   ;;  %v2069_v55 = vmov 0.001953125   ;;  %vm2070_vm3 = vmmov 0  }
  0x61   :  { %1504 = vmatprep.subr.bf16.mxu0 %v1880_v3  ;;  %v1889_v33 = vld [vmem:[#allocation7 + $0x58] sm:$0xff]   ;;  %v484_v49 = vld [vmem:[#allocation9] sm:$0xff]  ;;  %v485_v50 = vld [vmem:[#allocation9 + $0x8] sm:$0xff] }
  0x62   :  { %v1745_v51 = vpack.c.bf16 %v485_v50, %v484_v49  ;;  %v486_v53 = vld [vmem:[#allocation9 + $0x10] sm:$0xff]  ;;  %v487_v54 = vld [vmem:[#allocation9 + $0x18] sm:$0xff]  ;;  %v488_v57 = vld [vmem:[#allocation9 + $0x20] sm:$0xff] }
  0x63   :  { %v1748_v56 = vpack.c.bf16 %v487_v54, %v486_v53  ;;  %v489_v58 = vld [vmem:[#allocation9 + $0x28] sm:$0xff]  ;;  %v490_v60 = vld [vmem:[#allocation9 + $0x30] sm:$0xff]  ;;  %v491_v61 = vld [vmem:[#allocation9 + $0x38] sm:$0xff] }
  0x64   :  { %1505 = vmatpush3.bf16.msra.mxu0 %v1880_v3  ;;  %v1751_v59 = vpack.c.bf16 %v489_v58, %v488_v57  ;;  %v1754_v62 = vpack.c.bf16 %v491_v61, %v490_v60  ;;  %v492_v63 = vld [vmem:[#allocation9 + $0x40] sm:$0xff]  ;;  %v493_v1 = vld [vmem:[#allocation9 + $0x48] sm:$0xff]  ;;  %v494_v3 = vld [vmem:[#allocation9 + $0x50] sm:$0xff] }
  0x65   :  { %1506 = vmatprep.subr.bf16.mxu0 %v1881_v10  ;;  %v1757_v2 = vpack.c.bf16 %v493_v1, %v492_v63  ;;  %v495_v4 = vld [vmem:[#allocation9 + $0x58] sm:$0xff]  ;;  %v496_v6 = vld [vmem:[#allocation9 + $0x60] sm:$0xff]  ;;  %v497_v7 = vld [vmem:[#allocation9 + $0x68] sm:$0xff] }
  0x66   :  { %v134_v12 = vld [vmem:[#allocation2 + $0x1] sm:$0xff]  ;;  %v135_v13 = vld [vmem:[#allocation2 + $0x9] sm:$0xff]  ;;  %v1760_v5 = vpack.c.bf16 %v495_v4, %v494_v3  ;;  %v1763_v8 = vpack.c.bf16 %v497_v7, %v496_v6  ;;  %v1903_v1 = vld [vmem:[#allocation10 + $0x28] sm:$0xff]  }
  0x67   :  { %v120_v14 = vld [vmem:[#allocation2] sm:$0xff]  ;;  %v138_v15 = vpack.c.bf16 %v135_v13, %v134_v12  ;;  %v121_v18 = vld [vmem:[#allocation2 + $0x8] sm:$0xff]  ;;  %v122_v24 = vld [vmem:[#allocation2 + $0x18] sm:$0xff] }
  0x68   :  { %1507 = vmatpush3.bf16.msra.mxu0 %v1881_v10  ;;  %v136_v16 = vld [vmem:[#allocation2 + $0x19] sm:$0xff]  ;;  %v137_v17 = vld [vmem:[#allocation2 + $0x21] sm:$0xff]  ;;  %v124_v21 = vpack.c.bf16 %v121_v18, %v120_v14  ;;  %v308_v28 = vld [vmem:[#allocation2 + $0xa] sm:$0xff] }
  0x69   :  { %1512 = vmatprep.subr.bf16.mxu0 %v1882_v11  ;;  %v139_v19 = vpack.c.bf16 %v137_v17, %v136_v16  ;;  %1508 = vmatprep.mubr.msk.bf16.mxu0 %vm115_vm1, %v138_v15  ;;  %v123_v25 = vld [vmem:[#allocation2 + $0x20] sm:$0xff]  ;;  %v499_v10 = vld [vmem:[#allocation9 + $0x78] sm:$0xff]  ;;  %v1890_v14 = vld [vmem:[#allocation10 + $0x40] sm:$0xff]  }
  0x6a   :  { %v307_v27 = vld [vmem:[#allocation2 + $0x2] sm:$0xff]  ;;  %v125_v29 = vpack.c.bf16 %v123_v25, %v122_v24  ;;  %v309_v34 = vld [vmem:[#allocation2 + $0x1a] sm:$0xff]  ;;  %v1894_v18 = vld [vmem:[#allocation10 + $0x60] sm:$0xff]  }
  0x6b   :  { %1509 = vmatmul.mubr.msk.bf16.vlgmr.msra.gmra.mrb[0].mxu0 %vm115_vm1, %v139_v19  ;;  %v311_v30 = vpack.c.bf16 %v308_v28, %v307_v27  ;;  %v310_v35 = vld [vmem:[#allocation2 + $0x22] sm:$0xff]  ;;  %v1891_v15 = vld [vmem:[#allocation10 + $0x48] sm:$0xff]   ;;  %v1902_v63 = vld [vmem:[#allocation10 + $0x20] sm:$0xff]  }
  0x6c   :  { %1513 = vmatpush3.bf16.msra.mxu0 %v1882_v11  ;;  %1520 = vmatprep.mubr.msk.bf16.mxu0 %vm115_vm1, %v124_v21  ;;  %v312_v36 = vpack.c.bf16 %v310_v35, %v309_v34  ;;  %v498_v9 = vld [vmem:[#allocation9 + $0x70] sm:$0xff]  ;;  %v1893_v17 = vld [vmem:[#allocation10 + $0x58] sm:$0xff]   ;;  %v1895_v19 = vld [vmem:[#allocation10 + $0x68] sm:$0xff]  }
  0x6d   :  { %1514 = vmatprep.subr.bf16.mxu0 %v1883_v20  ;;  %v1766_v11 = vpack.c.bf16 %v499_v10, %v498_v9  ;;  %v1892_v16 = vld [vmem:[#allocation10 + $0x50] sm:$0xff]   ;;  %v1897_v21 = vld [vmem:[#allocation10 + $0x78] sm:$0xff]   ;;  %v1906_v4 = vld [vmem:[#allocation10 + $0x80] sm:$0xff]  }
  0x6e   :  { %v1905_v3 = vld [vmem:[#allocation10 + $0x38] sm:$0xff]   ;;  %v1907_v10 = vld [vmem:[#allocation10 + $0x88] sm:$0xff]  }
  0x70   :  { %1515 = vmatpush3.bf16.msra.mxu0 %v1883_v20  ;;  %v1896_v20 = vld [vmem:[#allocation10 + $0x70] sm:$0xff]  }
  0x71   :  { %1516 = vmatprep.subr.bf16.mxu0 %v1884_v22 }
  0x74   :  { %1517 = vmatpush3.bf16.msra.mxu0 %v1884_v22  ;;  %v1898_v22 = vld [vmem:[#allocation10] sm:$0xff]  }
  0x75   :  { %1518 = vmatprep.subr.bf16.mxu0 %v1885_v23 }
  0x78   :  { %1519 = vmatpush3.bf16.msra.mxu0 %v1885_v23 }
  0x79   :  { %1524 = vmatprep.subr.bf16.mxu0 %v1886_v26 }
  0x7b   :  { %1521 = vmatmul.mubr.msk.bf16.vlgmr.msra.gmra.mrb[0].mxu0 %vm115_vm1, %v125_v29 }
  0x7c   :  { %1525 = vmatpush3.bf16.msra.mxu0 %v1886_v26  ;;  %1532 = vmatprep.mubr.msk.bf16.mxu0 %vm115_vm1, %v311_v30  ;;  %v650_v30 = vlaneseq }
  0x7d   :  { %1526 = vmatprep.subr.bf16.mxu0 %v1887_v31 }
  0x80   :  { %1527 = vmatpush3.bf16.msra.mxu0 %v1887_v31  ;;  %v651_v31 = vshrl.u32 %v650_v30, 7 }
  0x81   :  { %1528 = vmatprep.subr.bf16.mxu0 %v1888_v32 }
  0x84   :  { %1529 = vmatpush3.bf16.msra.mxu0 %v1888_v32  ;;  %v642_v32 = vld [vmem:[%s2358_s2] sm:$0x1] }
  0x85   :  { %1530 = vmatprep.subr.bf16.mxu0 %v1889_v33 }
  0x88   :  { %1531 = vmatpush3.bf16.msra.mxu0 %v1889_v33  ;;  %v2276_v33 = vsub.s32 0, %v651_v31 }
  0x89   :  { %1606 = vmatprep.subr.bf16.mxu0 %v1890_v14 }
  0x8b   :  { %1533 = vmatmul.mubr.msk.bf16.vlgmr.msra.gmra.mrb[0].mxu0 %vm115_vm1, %v312_v36  ;;  %v646_v36 = vld [vmem:[%s2359_s3] sm:$0x1] }
  0x8c   :  { %1607 = vmatpush3.bf16.msra.mxu0 %v1890_v14  ;;  %v1910_v14 = vld [vmem:[#allocation10 + $0xa0] sm:$0xff]  }
  0x8d   :  { %1608 = vmatprep.subr.bf16.mxu0 %v1891_v15 }
  0x90   :  { %1609 = vmatpush3.bf16.msra.mxu0 %v1891_v15  ;;  %v1911_v15 = vld [vmem:[#allocation10 + $0xa8] sm:$0xff]  }
  0x91   :  { %1610 = vmatprep.subr.bf16.mxu0 %v1892_v16 }
  0x94   :  { %1611 = vmatpush3.bf16.msra.mxu0 %v1892_v16  ;;  %v1912_v16 = vld [vmem:[#allocation10 + $0xb0] sm:$0xff]  }
  0x95   :  { %1612 = vmatprep.subr.bf16.mxu0 %v1893_v17 }
  0x98   :  { %1613 = vmatpush3.bf16.msra.mxu0 %v1893_v17  ;;  %v1913_v17 = vld [vmem:[#allocation10 + $0xb8] sm:$0xff]  }
  0x99   :  { %1614 = vmatprep.subr.bf16.mxu0 %v1894_v18 }
  0x9c   :  { %1615 = vmatpush3.bf16.msra.mxu0 %v1894_v18 }
  0x9d   :  { %1616 = vmatprep.subr.bf16.mxu0 %v1895_v19 }
  0xa0   :  { %1617 = vmatpush3.bf16.msra.mxu0 %v1895_v19 }
  0xa1   :  { %1618 = vmatprep.subr.bf16.mxu0 %v1896_v20 }
  0xa4   :  { %1619 = vmatpush3.bf16.msra.mxu0 %v1896_v20 }
  0xa5   :  { %1620 = vmatprep.subr.bf16.mxu0 %v1897_v21 }
  0xa8   :  { %1621 = vmatpush3.bf16.msra.mxu0 %v1897_v21 }
  0xa9   :  { %1626 = vmatprep.subr.bf16.mxu0 %v1898_v22 }
 0x15e   :  { %v2230_v37 = vpop.f32.mrb[0].mxu0 }
 0x15f   :  { %v2232_v38 = vpop.f32.mrb[1].mxu0  ;;  %v407_v40 = vmul.f32 %v2230_v37, %v2230_v37 }
 0x160   :  { %v2234_v39 = vpop.f32.mrb[2].mxu0  ;;  %v405_v44 = vmul.f32 %v2232_v38, %v2232_v38 }
 0x161   :  { %v408_v41 = vmul.f32 %v2234_v39, %v2234_v39  ;;  %v1742_v42 = vpack.c.bf16 %v2234_v39, %v2230_v37  ;;  %v2242_v43 = vpop.f32.mrb[3].mxu0 }
 0x162   :  { %v406_v45 = vmul.f32 %v2242_v43, %v2242_v43  ;;  %v1738_v46 = vpack.c.bf16 %v2242_v43, %v2232_v38 }
 0x163   :  { %v1740_v47 = vpack.c.bf16 %v408_v41, %v407_v40 }
 0x164   :  { %v1736_v48 = vpack.c.bf16 %v406_v45, %v405_v44 }
 0x166   :  { %1737 = vmatprep.subr.bf16.mxu1 %v1736_v48 }
 0x167   :  { %1739 = vmatpush1.bf16.msra.mxu1 %v1738_v46 }
 0x168   :  { %1741 = vmatprep.subr.bf16.mxu1 %v1740_v47 }
 0x16b   :  { %1743 = vmatpush1.bf16.msra.mxu1 %v1742_v42 }
 0x16c   :  { %1744 = vmatprep.subr.bf16.mxu1 %v2068_v52 }
 0x16e   :  { %1349 = vmatmul.mubr.msk.f32.vlgmr.msra.gmra.mrb[0].mxu1 %vm409_vm2, %v2069_v55 }
 0x16f   :  { %1746 = vmatpush3.bf16.msra.mxu1 %v1745_v51  ;;  %1568 = vmatprep.mubr.msk.f32.mxu1 %vm2070_vm3, %v2067_v0 }
 0x170   :  { %1747 = vmatprep.subr.bf16.mxu1 %v2068_v52 }
 0x173   :  { %1749 = vmatpush3.bf16.msra.mxu1 %v1748_v56 }
 0x174   :  { %1750 = vmatprep.subr.bf16.mxu1 %v2068_v52 }
 0x177   :  { %1752 = vmatpush3.bf16.msra.mxu1 %v1751_v59 }
 0x178   :  { %1753 = vmatprep.subr.bf16.mxu1 %v2068_v52 }
 0x17b   :  { %1755 = vmatpush3.bf16.msra.mxu1 %v1754_v62 }
 0x17c   :  { %1756 = vmatprep.subr.bf16.mxu1 %v2068_v52 }
 0x17f   :  { %1758 = vmatpush3.bf16.msra.mxu1 %v1757_v2 }
 0x180   :  { %1759 = vmatprep.subr.bf16.mxu1 %v2068_v52 }
 0x183   :  { %1761 = vmatpush3.bf16.msra.mxu1 %v1760_v5 }
 0x184   :  { %1762 = vmatprep.subr.bf16.mxu1 %v2068_v52 }
 0x187   :  { %1764 = vmatpush3.bf16.msra.mxu1 %v1763_v8 }
 0x188   :  { %1765 = vmatprep.subr.bf16.mxu1 %v2068_v52 }
 0x18b   :  { %1767 = vmatpush3.bf16.msra.mxu1 %v1766_v11 }
 0x18c   :  { %1768 = vmatprep.subr.bf16.mxu1 %v2068_v52 }
 0x241   :  { %v479_v12 = vpop.f32.mrb[0].mxu1 }
 0x242   :  { %v481_v13 = vpop.f32.mrb[1].mxu1  ;;  %1569 = vmatmul.mubr.f32.vlgmr.msra.gmra.mrb[2].mxu1 %v479_v12  ;;  %v1908_v12 = vld [vmem:[#allocation10 + $0x90] sm:$0xff]  }
 0x243   :  { %1770 = vmatpush3.bf16.msra.mxu1 %v1745_v51  ;;  %1603 = vmatprep.mubr.msk.f32.mxu1 %vm2070_vm3, %v2067_v0 }
 0x244   :  { %1771 = vmatprep.subr.bf16.mxu1 %v2068_v52 }
 0x247   :  { %1773 = vmatpush3.bf16.msra.mxu1 %v1748_v56 }
 0x248   :  { %1774 = vmatprep.subr.bf16.mxu1 %v2068_v52 }
 0x24b   :  { %1776 = vmatpush3.bf16.msra.mxu1 %v1751_v59  ;;  %v1899_v59 = vld [vmem:[#allocation10 + $0x8] sm:$0xff]  }
 0x24c   :  { %1777 = vmatprep.subr.bf16.mxu1 %v2068_v52 }
 0x24f   :  { %1779 = vmatpush3.bf16.msra.mxu1 %v1754_v62  ;;  %v1901_v62 = vld [vmem:[#allocation10 + $0x18] sm:$0xff]  }
 0x250   :  { %1780 = vmatprep.subr.bf16.mxu1 %v2068_v52 }
 0x253   :  { %1782 = vmatpush3.bf16.msra.mxu1 %v1757_v2  ;;  %v1904_v2 = vld [vmem:[#allocation10 + $0x30] sm:$0xff]  }
 0x254   :  { %1783 = vmatprep.subr.bf16.mxu1 %v2068_v52 }
 0x257   :  { %1785 = vmatpush3.bf16.msra.mxu1 %v1760_v5 }
 0x258   :  { %1786 = vmatprep.subr.bf16.mxu1 %v2068_v52 }
 0x25b   :  { %1788 = vmatpush3.bf16.msra.mxu1 %v1763_v8 }
 0x25c   :  { %1789 = vmatprep.subr.bf16.mxu1 %v2068_v52 }
 0x25f   :  { %1791 = vmatpush3.bf16.msra.mxu1 %v1766_v11 }
 0x262   :  { %1604 = vmatmul.mubr.f32.vlgmr.msra.gmra.mrb[4].mxu1 %v481_v13  ;;  %v1909_v13 = vld [vmem:[#allocation10 + $0x98] sm:$0xff]  }
 0x263   :  { %1112 = vmatprep.mubr.f32.mxu1 %v2067_v0 }
 0x315   :  { %v566_v23 = vpop.f32.mrb[2].mxu1 }
 0x316   :  { %v1570_v24 = vpop.f32.mrb[3].mxu1  ;;  %v640_v25 = vmul.f32 %v566_v23, %v566_v23 }
 0x335   :  { %v636_v26 = vpop.f32.mrb[4].mxu1 }
 0x336   :  { %v641_v27 = vsub.f32 %v636_v26, %v640_v25  ;;  %v1605_v28 = vpop.f32.mrb[5].mxu1 }
 0x338   :  { %v643_v29 = vadd.f32 1e-05, %v641_v27 }
 0x33a   :  { %1914 = vrsqrt.f32 %v643_v29 }
 0x344   :  { %v1915_v34 = vpop.eup %1914 }
 0x345   :  { %v645_v35 = vmul.f32 %v1915_v34, %v642_v32  ;;  %v1119_v34 = vld [vmem:[#allocation12] sm:$0xff] }
 0x347   :  { %v647_v40 = vmul.f32 %v645_v35, %v566_v23  ;;  %v653_v41 = vrot.slane %v645_v35, %v2276_v33  ;;  %v1120_v35 = vld [vmem:[#allocation12 + $0x8] sm:$0xff] }
 0x349   :  { %v648_v42 = vsub.f32 %v646_v36, %v647_v40  ;;  %v655_v44 = vmul.f32 %v653_v41, %v2232_v38  ;;  %v656_v45 = vmul.f32 %v653_v41, %v2242_v43  ;;  %v657_v46 = vmul.f32 %v2230_v37, %v653_v41  ;;  %v1900_v37 = vld [vmem:[#allocation10 + $0x10] sm:$0xff]  }
 0x34a   :  { %v658_v47 = vmul.f32 %v2234_v39, %v653_v41  ;;  %v1801_v36 = vpack.c.bf16 %v1120_v35, %v1119_v34  ;;  %v1121_v40 = vld [vmem:[#allocation12 + $0x10] sm:$0xff]  ;;  %v1122_v41 = vld [vmem:[#allocation12 + $0x18] sm:$0xff] }
 0x34b   :  { %v663_v48 = vrot.slane %v648_v42, %v2276_v33  ;;  %v1804_v42 = vpack.c.bf16 %v1122_v41, %v1121_v40 }
 0x34d   :  { %v665_v49 = vadd.f32 %v663_v48, %v655_v44  ;;  %v666_v50 = vadd.f32 %v663_v48, %v656_v45  ;;  %v667_v51 = vadd.f32 %v663_v48, %v657_v46  ;;  %v668_v53 = vadd.f32 %v663_v48, %v658_v47  ;;  %v1123_v44 = vld [vmem:[#allocation12 + $0x20] sm:$0xff]  ;;  %v1124_v45 = vld [vmem:[#allocation12 + $0x28] sm:$0xff]  ;;  %v1125_v47 = vld [vmem:[#allocation12 + $0x30] sm:$0xff] }
 0x34e   :  { %v1807_v46 = vpack.c.bf16 %v1124_v45, %v1123_v44  ;;  %v1126_v48 = vld [vmem:[#allocation12 + $0x38] sm:$0xff] }
 0x34f   :  { %v669_v54 = vmax.f32 %v665_v49, 0.0  ;;  %v670_v56 = vmax.f32 %v666_v50, 0.0  ;;  %v671_v57 = vmax.f32 %v667_v51, 0.0  ;;  %v672_v58 = vmax.f32 %v668_v53, 0.0  ;;  %v1128_v50 = vld [vmem:[#allocation12 + $0x48] sm:$0xff]  ;;  %v1129_v53 = vld [vmem:[#allocation12 + $0x50] sm:$0xff] }
 0x350   :  { %v1810_v49 = vpack.c.bf16 %v1126_v48, %v1125_v47 }
 0x351   :  { %677 = vst [vmem:[#allocation3 + $0x1] sm:$0xff] %v669_v54  ;;  %678 = vst [vmem:[#allocation3 + $0x9] sm:$0xff] %v670_v56  ;;  %v707_v38 = vpack.c.bf16 %v670_v56, %v669_v54  ;;  %v708_v43 = vpack.c.bf16 %v672_v58, %v671_v57  ;;  %v1130_v54 = vld [vmem:[#allocation12 + $0x58] sm:$0xff] }
 0x352   :  { %679 = vst [vmem:[#allocation3 + $0x19] sm:$0xff] %v671_v57  ;;  %680 = vst [vmem:[#allocation3 + $0x21] sm:$0xff] %v672_v58  ;;  %v1816_v56 = vpack.c.bf16 %v1130_v54, %v1129_v53  ;;  %v1131_v57 = vld [vmem:[#allocation12 + $0x60] sm:$0xff]  ;;  %v1132_v58 = vld [vmem:[#allocation12 + $0x68] sm:$0xff] }
 0x353   :  { %1622 = vmatprep.mubr.bf16.mxu0 %v707_v38  ;;  %v1819_v38 = vpack.c.bf16 %v1132_v58, %v1131_v57 }
 0x354   :  { %1623 = vmatmul.mubr.bf16.vlgmr.msra.gmra.mrb[4].mxu0 %v708_v43  ;;  %v1133_v43 = vld [vmem:[#allocation12 + $0x70] sm:$0xff] }
 0x355   :  { %1627 = vmatpush3.bf16.msra.mxu0 %v1898_v22 }
 0x356   :  { %1628 = vmatprep.subr.bf16.mxu0 %v1899_v59 }
 0x358   :  { %v681_v39 = vld [vmem:[#allocation3] sm:$0xff]  ;;  %v682_v60 = vld [vmem:[#allocation3 + $0x8] sm:$0xff] }
 0x359   :  { %v685_v61 = vpack.c.bf16 %v682_v60, %v681_v39  ;;  %1629 = vmatpush3.bf16.msra.mxu0 %v1899_v59  ;;  %v683_v5 = vld [vmem:[#allocation3 + $0x18] sm:$0xff]  ;;  %v684_v6 = vld [vmem:[#allocation3 + $0x20] sm:$0xff]  ;;  %v921_v8 = vld [vmem:[#allocation3 + $0xa] sm:$0xff] }
 0x35a   :  { %1630 = vmatprep.subr.bf16.mxu0 %v1900_v37  ;;  %v920_v7 = vld [vmem:[#allocation3 + $0x2] sm:$0xff]  ;;  %v686_v9 = vpack.c.bf16 %v684_v6, %v683_v5  ;;  %v922_v18 = vld [vmem:[#allocation3 + $0x1a] sm:$0xff] }
 0x35b   :  { %1642 = vmatprep.mubr.bf16.mxu0 %v685_v61  ;;  %v924_v11 = vpack.c.bf16 %v921_v8, %v920_v7  ;;  %v923_v19 = vld [vmem:[#allocation3 + $0x22] sm:$0xff]  ;;  %v1134_v59 = vld [vmem:[#allocation12 + $0x78] sm:$0xff] }
 0x35c   :  { %v925_v20 = vpack.c.bf16 %v923_v19, %v922_v18 }
 0x35d   :  { %1631 = vmatpush3.bf16.msra.mxu0 %v1900_v37  ;;  %v1822_v37 = vpack.c.bf16 %v1134_v59, %v1133_v43 }
 0x35e   :  { %1632 = vmatprep.subr.bf16.mxu0 %v1901_v62 }
 0x361   :  { %1633 = vmatpush3.bf16.msra.mxu0 %v1901_v62 }
 0x362   :  { %1634 = vmatprep.subr.bf16.mxu0 %v1902_v63 }
 0x365   :  { %1635 = vmatpush3.bf16.msra.mxu0 %v1902_v63 }
 0x366   :  { %1636 = vmatprep.subr.bf16.mxu0 %v1903_v1 }
 0x369   :  { %1637 = vmatpush3.bf16.msra.mxu0 %v1903_v1 }
 0x36a   :  { %1638 = vmatprep.subr.bf16.mxu0 %v1904_v2 }
 0x36d   :  { %1639 = vmatpush3.bf16.msra.mxu0 %v1904_v2 }
 0x36e   :  { %1640 = vmatprep.subr.bf16.mxu0 %v1905_v3 }
 0x371   :  { %1641 = vmatpush3.bf16.msra.mxu0 %v1905_v3 }
 0x372   :  { %1646 = vmatprep.subr.bf16.mxu0 %v1906_v4 }
 0x374   :  { %1643 = vmatmul.mubr.bf16.vlgmr.msra.gmra.mrb[4].mxu0 %v686_v9 }
 0x375   :  { %1647 = vmatpush3.bf16.msra.mxu0 %v1906_v4  ;;  %1662 = vmatprep.mubr.bf16.mxu0 %v924_v11  ;;  %v1277_v4 = vld [vmem:[%s2362_s6] sm:$0x1]  ;;  %s2071_s6 = smov [#allocation13]  }
 0x376   :  { %1648 = vmatprep.subr.bf16.mxu0 %v1907_v10  ;;  %s1317_s13 = sshll.u32 %s2071_s6, 4  ;;  %s1318_s13 = int_to_ptr.vmem [resolvable:$true] %s1317_s13 }
 0x377   :  { %p2033_p13 = scmp.lt.s32.totalorder %s1318_s13, %s1318_s13 }
 0x379   :  { %1649 = vmatpush3.bf16.msra.mxu0 %v1907_v10 }
 0x37a   :  { %1650 = vmatprep.subr.bf16.mxu0 %v1908_v12 }
 0x37d   :  { %1651 = vmatpush3.bf16.msra.mxu0 %v1908_v12 }
 0x37e   :  { %1652 = vmatprep.subr.bf16.mxu0 %v1909_v13 }
 0x381   :  { %1653 = vmatpush3.bf16.msra.mxu0 %v1909_v13 }
 0x382   :  { %1654 = vmatprep.subr.bf16.mxu0 %v1910_v14 }
 0x385   :  { %1655 = vmatpush3.bf16.msra.mxu0 %v1910_v14 }
 0x386   :  { %1656 = vmatprep.subr.bf16.mxu0 %v1911_v15 }
 0x389   :  { %1657 = vmatpush3.bf16.msra.mxu0 %v1911_v15 }
 0x38a   :  { %1658 = vmatprep.subr.bf16.mxu0 %v1912_v16 }
 0x38d   :  { %1659 = vmatpush3.bf16.msra.mxu0 %v1912_v16 }
 0x38e   :  { %1660 = vmatprep.subr.bf16.mxu0 %v1913_v17 }
 0x391   :  { %1661 = vmatpush3.bf16.msra.mxu0 %v1913_v17 }
 0x394   :  { %1663 = vmatmul.mubr.bf16.vlgmr.msra.gmra.mrb[4].mxu0 %v925_v20 }
 0x467   :  { %v2287_v21 = vpop.f32.mrb[4].mxu0 }
 0x468   :  { %v2289_v22 = vpop.f32.mrb[5].mxu0  ;;  %v1046_v24 = vmul.f32 %v2287_v21, %v2287_v21 }
 0x469   :  { %v2291_v23 = vpop.f32.mrb[6].mxu0  ;;  %v1044_v28 = vmul.f32 %v2289_v22, %v2289_v22 }
 0x46a   :  { %v1047_v25 = vmul.f32 %v2291_v23, %v2291_v23  ;;  %v1798_v26 = vpack.c.bf16 %v2291_v23, %v2287_v21  ;;  %v2299_v27 = vpop.f32.mrb[7].mxu0 }
 0x46b   :  { %v1045_v29 = vmul.f32 %v2299_v27, %v2299_v27  ;;  %v1794_v30 = vpack.c.bf16 %v2299_v27, %v2289_v22 }
 0x46c   :  { %v1796_v31 = vpack.c.bf16 %v1047_v25, %v1046_v24 }
 0x46d   :  { %v1792_v32 = vpack.c.bf16 %v1045_v29, %v1044_v28 }
 0x46f   :  { %1793 = vmatprep.subr.bf16.mxu1 %v1792_v32 }
 0x470   :  { %1795 = vmatpush1.bf16.msra.mxu1 %v1794_v30 }
 0x471   :  { %1797 = vmatprep.subr.bf16.mxu1 %v1796_v31 }
 0x474   :  { %1799 = vmatpush1.bf16.msra.mxu1 %v1798_v26 }
 0x475   :  { %1800 = vmatprep.subr.bf16.mxu1 %v2068_v52 }
 0x477   :  { %1374 = vmatmul.mubr.msk.f32.vlgmr.msra.gmra.mrb[6].mxu1 %vm409_vm2, %v2069_v55  ;;  %v1127_v55 = vld [vmem:[#allocation12 + $0x40] sm:$0xff] }
 0x478   :  { %1802 = vmatpush3.bf16.msra.mxu1 %v1801_v36  ;;  %1698 = vmatprep.mubr.msk.f32.mxu1 %vm2070_vm3, %v2067_v0  ;;  %v1813_v51 = vpack.c.bf16 %v1128_v50, %v1127_v55 }
 0x479   :  { %1803 = vmatprep.subr.bf16.mxu1 %v2068_v52 }
 0x47c   :  { %1805 = vmatpush3.bf16.msra.mxu1 %v1804_v42 }
 0x47d   :  { %1806 = vmatprep.subr.bf16.mxu1 %v2068_v52 }
 0x480   :  { %1808 = vmatpush3.bf16.msra.mxu1 %v1807_v46 }
 0x481   :  { %1809 = vmatprep.subr.bf16.mxu1 %v2068_v52 }
 0x484   :  { %1811 = vmatpush3.bf16.msra.mxu1 %v1810_v49 }
 0x485   :  { %1812 = vmatprep.subr.bf16.mxu1 %v2068_v52 }
 0x488   :  { %1814 = vmatpush3.bf16.msra.mxu1 %v1813_v51 }
 0x489   :  { %1815 = vmatprep.subr.bf16.mxu1 %v2068_v52 }
 0x48c   :  { %1817 = vmatpush3.bf16.msra.mxu1 %v1816_v56 }
 0x48d   :  { %1818 = vmatprep.subr.bf16.mxu1 %v2068_v52 }
 0x490   :  { %1820 = vmatpush3.bf16.msra.mxu1 %v1819_v38 }
 0x491   :  { %1821 = vmatprep.subr.bf16.mxu1 %v2068_v52 }
 0x494   :  { %1823 = vmatpush3.bf16.msra.mxu1 %v1822_v37 }
 0x495   :  { %1824 = vmatprep.subr.bf16.mxu1 %v2068_v52 }
 0x54a   :  { %v1114_v39 = vpop.f32.mrb[6].mxu1 }
 0x54b   :  { %v1116_v60 = vpop.f32.mrb[7].mxu1  ;;  %1699 = vmatmul.mubr.f32.vlgmr.msra.gmra.mrb[8].mxu1 %v1114_v39 }
 0x54c   :  { %1826 = vmatpush3.bf16.msra.mxu1 %v1801_v36  ;;  %1733 = vmatprep.mubr.msk.f32.mxu1 %vm2070_vm3, %v2067_v0 }
 0x54d   :  { %1827 = vmatprep.subr.bf16.mxu1 %v2068_v52 }
 0x550   :  { %1829 = vmatpush3.bf16.msra.mxu1 %v1804_v42 }
 0x551   :  { %1830 = vmatprep.subr.bf16.mxu1 %v2068_v52 }
 0x554   :  { %1832 = vmatpush3.bf16.msra.mxu1 %v1807_v46 }
 0x555   :  { %1833 = vmatprep.subr.bf16.mxu1 %v2068_v52 }
 0x558   :  { %1835 = vmatpush3.bf16.msra.mxu1 %v1810_v49 }
 0x559   :  { %1836 = vmatprep.subr.bf16.mxu1 %v2068_v52 }
 0x55c   :  { %1838 = vmatpush3.bf16.msra.mxu1 %v1813_v51 }
 0x55d   :  { %1839 = vmatprep.subr.bf16.mxu1 %v2068_v52 }
 0x560   :  { %1841 = vmatpush3.bf16.msra.mxu1 %v1816_v56 }
 0x561   :  { %1842 = vmatprep.subr.bf16.mxu1 %v2068_v52 }
 0x564   :  { %1844 = vmatpush3.bf16.msra.mxu1 %v1819_v38 }
 0x565   :  { %1845 = vmatprep.subr.bf16.mxu1 %v2068_v52  ;;  %v1281_v52 = vld [vmem:[%s2363_s7] sm:$0x1]  ;;  %s2028_s7 = scalar_lea.vmem %s1318_s13, 512 }
 0x566   :  { %p2029_p12 = scmp.ne.s32.totalorder %s1318_s13, %s2028_s7  ;;  %p2034_p0 = scmp.lt.s32.totalorder %s2028_s7, %s2028_s7 }
 0x568   :  { %1847 = vmatpush3.bf16.msra.mxu1 %v1822_v37  ;;  %p2035_p1 = por %p2034_p0, %p2033_p13 }
 0x56a   :  { %p2036_p2 = pnand %p2035_p1, %p2029_p12 }
 0x56b   :  { %1734 = vmatmul.mubr.f32.vlgmr.msra.gmra.mrb[10].mxu1 %v1116_v60 }
 0x61e   :  { %v1201_v0 = vpop.f32.mrb[8].mxu1 }
 0x61f   :  { %v1700_v61 = vpop.f32.mrb[9].mxu1  ;;  %v1275_v62 = vmul.f32 %v1201_v0, %v1201_v0 }
 0x63e   :  { %v1271_v63 = vpop.f32.mrb[10].mxu1 }
 0x63f   :  { %v1276_v1 = vsub.f32 %v1271_v63, %v1275_v62  ;;  %v1735_v2 = vpop.f32.mrb[11].mxu1 }
 0x641   :  { %v1278_v3 = vadd.f32 1e-05, %v1276_v1 }
 0x643   :  { %1916 = vrsqrt.f32 %v1278_v3 }
 0x64d   :  { %v1917_v5 = vpop.eup %1916 }
 0x64e   :  { %v1280_v6 = vmul.f32 %v1917_v5, %v1277_v4 }
 0x650   :  { %v1282_v7 = vmul.f32 %v1280_v6, %v1201_v0  ;;  %v1288_v8 = vrot.slane %v1280_v6, %v2276_v33 }
 0x652   :  { %v1283_v9 = vsub.f32 %v1281_v52, %v1282_v7  ;;  %v1290_v10 = vmul.f32 %v1288_v8, %v2289_v22  ;;  %v1291_v11 = vmul.f32 %v1288_v8, %v2299_v27  ;;  %v1292_v12 = vmul.f32 %v2287_v21, %v1288_v8 }
 0x653   :  { %v1293_v13 = vmul.f32 %v2291_v23, %v1288_v8 }
 0x654   :  { %v1298_v14 = vrot.slane %v1283_v9, %v2276_v33 }
 0x656   :  { %v1300_v15 = vadd.f32 %v1298_v14, %v1290_v10  ;;  %v1301_v16 = vadd.f32 %v1298_v14, %v1291_v11  ;;  %v1302_v17 = vadd.f32 %v1298_v14, %v1292_v12  ;;  %v1303_v18 = vadd.f32 %v1298_v14, %v1293_v13 }
 0x658   :  { %v1304_v19 = vmax.f32 %v1300_v15, 0.0  ;;  %v1305_v20 = vmax.f32 %v1301_v16, 0.0  ;;  %v1306_v24 = vmax.f32 %v1302_v17, 0.0  ;;  %v1307_v25 = vmax.f32 %v1303_v18, 0.0 }
 0x65a   :  { %1308 = vst [vmem:[#allocation13] sm:$0xff] %v1304_v19  ;;  %1309 = vst [vmem:[#allocation13 + $0x8] sm:$0xff] %v1305_v20 }
 0x65b   :  { %1310 = vst [vmem:[#allocation13 + $0x10] sm:$0xff] %v1306_v24  ;;  %1311 = vst [vmem:[#allocation13 + $0x18] sm:$0xff] %v1307_v25 }
 0x65c   :  { %2039 = shalt.err (!%p2036_p2)
}
 0x65d   :  { %s2040_s14 = scalar_lea.hbm %s2365_s9, 512 }
 0x65e   :  { %p2041_p3 = scmp.ne.s32.totalorder %s2365_s9, %s2040_s14  ;;  %p2044_p4 = scmp.lt.u32.totalorder %s2040_s14, %s2365_s9 }
 0x660   :  { %p2046_p5 = pnand %p2044_p4, %p2041_p3 }
 0x662   :  { %2049 = shalt.err (!%p2046_p5)
}
 0x663   :  { %1323 = dma.vmem_to_hbm [thread:$0]  %s1318_s13, 512, %s2365_s9, [#allocation6], %s2064_s0, %s2064_s0, %s2065_s21  }
 0x664   :  { %2056 = dma.done.wait [#allocation6], 512  }
 0x665   :  { %2057 = vsyncadd [#allocation6], 4294966784 }
 0x666   :  { %1327 = vsyncpa [#allocation5], 1 }
 0x667   :  { %1328 = vsyncpa [#allocation8], 1 }
 0x668   :  { %1329 = vsyncpa [#allocation11], 1 }
 0x669   :  { %1330 = vsyncpa [#allocation6], 1 }

</bundles_post_ra>
